<compile_context>
chip_gen: v6e
topology: v6e:2x2x1
jax: 0.10.0
libtpu: 0.0.40
codegen_flags: <defaults>
</compile_context>

<pallas_src>
import jax
import jax.numpy as jnp
from jax.experimental import pallas as pl
from jax.experimental.pallas import tpu as pltpu


def _cdiv(a, b):
    return (a + b - 1) // b


def _round_up(n, m):
    return _cdiv(n, m) * m


def _mlp_kernel(x_ref, w1_ref, w2_ref, o_ref):
    # x_ref: [TM, Dp]   w1_ref: [Dp, Hp]   w2_ref: [Hp, G]   o_ref: [TM, G]
    h = jnp.dot(x_ref[...], w1_ref[...], preferred_element_type=jnp.float32)
    h = jnp.maximum(h, 0.0)                                   # ReLU, f32
    z = jnp.dot(h, w2_ref[...], preferred_element_type=jnp.float32)
    o_ref[...] = jax.nn.sigmoid(z).astype(o_ref.dtype)


def _pick_tile(rows, row_hbm_bytes, row_vmem_bytes):
    """Pick the batch-tile (packed rows per grid step) from this chip's VMEM."""
    try:
        vmem_cap = int(pltpu.get_tpu_info().vmem_capacity_bytes)
    except Exception:
        vmem_cap = 64 << 20                       # conservative (v7x-sized) fallback
    budget = vmem_cap // 2                        # room for double-buffered slabs
    tm_vmem = max(8, budget // row_vmem_bytes)
    tm_bw = max(8, (6 << 20) // row_hbm_bytes)    # ~6 MiB of x HBM traffic / step
    half_rows = _round_up(_cdiv(rows, 2), 8)      # keep >= 2 steps for v7x's 2 TCs
    tm = max(8, (min(tm_vmem, tm_bw, half_rows) // 8) * 8)
    if tm >= rows:
        tm = rows                                 # single full-array block
    return tm, vmem_cap


def mlp_classifier2_forward(x, w_fc1, w_fc2):
    """MLPClassifier2.forward.  x: [B, D], w_fc1: [H, D], w_fc2: [1, H]."""
    B, D = x.shape
    H = w_fc1.shape[0]
    assert w_fc1.shape == (H, D) and w_fc2.shape == (1, H)

    # Lane-pack G batch rows per VMEM row when the feature dim is narrow.
    if D <= 128 and 128 % D == 0 and B % (128 // D) == 0:
        G = 128 // D
    else:
        G = 1
    Bp, Dp, Hp = B // G, G * D, G * H

    x_p = x.reshape(Bp, Dp)                               # free (row-major view)
    eye = jnp.eye(G, dtype=w_fc1.dtype)
    w1_bd = jnp.kron(eye, w_fc1.T)                        # [Dp, Hp] block-diagonal
    w2_bd = jnp.kron(eye, w_fc2.T)                        # [Hp, G ] block-diagonal

    in_bytes = jnp.dtype(x.dtype).itemsize
    row_hbm_bytes = Dp * in_bytes
    # Per packed row, double-buffered: lane-padded x tile + f32 output tile.
    row_vmem_bytes = 2 * max(Dp, 128) * in_bytes + 2 * 128 * 4
    tm, vmem_cap = _pick_tile(Bp, row_hbm_bytes, row_vmem_bytes)
    grid = _cdiv(Bp, tm)

    # Raise the scoped-VMEM limit so large tiles fit, with headroom below physical.
    need = tm * row_vmem_bytes + (2 << 20)
    vmem_limit = int(min(max(need + (8 << 20), 32 << 20), int(vmem_cap * 0.9)))

    out = pl.pallas_call(
        _mlp_kernel,
        out_shape=jax.ShapeDtypeStruct((Bp, G), jnp.float32),
        grid_spec=pltpu.PrefetchScalarGridSpec(
            num_scalar_prefetch=0,
            grid=(grid,),
            in_specs=[
                pl.BlockSpec((tm, Dp), lambda i: (i, 0)),   # streamed x tile
                pl.BlockSpec((Dp, Hp), lambda i: (0, 0)),   # VMEM-resident weight
                pl.BlockSpec((Hp, G), lambda i: (0, 0)),    # VMEM-resident weight
            ],
            out_specs=pl.BlockSpec((tm, G), lambda i: (i, 0)),
        ),
        compiler_params=pltpu.CompilerParams(
            dimension_semantics=("parallel",),
            vmem_limit_bytes=vmem_limit,
        ),
    )(x_p, w1_bd, w2_bd)

    # TODO(synk): if D grows to many thousands, add a K grid axis ("arbitrary",
    # last) with an f32 accumulator + pl.when epilogue; at this module's shapes
    # the whole contraction fits comfortably in one tile.

    # torch's x.squeeze(): (B, 1) -> (B,), and B == 1 -> 0-d scalar.
    return jnp.squeeze(out.reshape(B).astype(x.dtype))


def _reference(x, w_fc1, w_fc2):
    h = jnp.maximum(x @ w_fc1.T, 0.0)
    return jnp.squeeze(jax.nn.sigmoid(h @ w_fc2.T), axis=-1)


if __name__ == "__main__":
    # Shapes consistent with the module: input_dim=32, factor=4 -> hidden=8.
    D, FACTOR = 32, 4
    H = D // FACTOR

    key = jax.random.PRNGKey(0)
    kx, k1, k2, kx2 = jax.random.split(key, 4)

    w_fc1 = jax.random.uniform(k1, (H, D), jnp.float32, -1.0, 1.0) / jnp.sqrt(D)
    w_fc2 = jax.random.uniform(k2, (1, H), jnp.float32, -1.0, 1.0) / jnp.sqrt(H)

    # Small case (single full-array block, grid = 1).
    B = 8
    x = jax.random.normal(kx, (B, D), dtype=jnp.float32)
    y = jax.block_until_ready(mlp_classifier2_forward(x, w_fc1, w_fc2))
    y_ref = _reference(x, w_fc1, w_fc2)
    assert y.shape == (B,)
    assert jnp.allclose(y, y_ref, atol=1e-4, rtol=1e-4)

    # Larger ragged batch: exercises the multi-step "parallel" grid and the
    # partial tail block (no wrapper-side padding).
    B2 = 4100
    x2 = jax.random.normal(kx2, (B2, D), dtype=jnp.float32)
    y2 = jax.block_until_ready(mlp_classifier2_forward(x2, w_fc1, w_fc2))
    y2_ref = _reference(x2, w_fc1, w_fc2)
    assert y2.shape == (B2,)
    assert jnp.allclose(y2, y2_ref, atol=1e-4, rtol=1e-4)

    print("KERNEL_OK")
</pallas_src>

<mosaic_0001>
module attributes {stable_mosaic.version = 11 : i64} {
  func.func @_mlp_kernel(%arg0: i32, %arg1: memref<2x128xf32, #tpu.memory_space<vmem>>, %arg2: memref<128x32xf32, #tpu.memory_space<vmem>>, %arg3: memref<32x4xf32, #tpu.memory_space<vmem>>, %arg4: memref<2x4xf32, #tpu.memory_space<vmem>>) attributes {dimension_semantics = [#tpu.dimension_semantics<parallel>], iteration_bounds = array<i64: 1>, scalar_prefetch = 0 : i64, scratch_operands = 0 : i64, tpu.core_type = #tpu.core_type<tc>, window_params = [{transform_indices = @transform_0, window_bounds = array<i64: 2, 128>}, {pipeline_mode = #tpu.pipeline_mode<synchronous>, transform_indices = @transform_1, window_bounds = array<i64: 128, 32>}, {pipeline_mode = #tpu.pipeline_mode<synchronous>, transform_indices = @transform_2, window_bounds = array<i64: 32, 4>}, {transform_indices = @transform_3, window_bounds = array<i64: 2, 4>}]} {
    %c0 = arith.constant 0 : index
    %c0_0 = arith.constant 0 : index
    %0 = vector.load %arg1[%c0, %c0_0] : memref<2x128xf32, #tpu.memory_space<vmem>>, vector<2x128xf32>
    %c0_1 = arith.constant 0 : index
    %c0_2 = arith.constant 0 : index
    %1 = vector.load %arg2[%c0_1, %c0_2] : memref<128x32xf32, #tpu.memory_space<vmem>>, vector<128x32xf32>
    %cst = arith.constant dense<0.000000e+00> : vector<2x32xf32>
    %2 = tpu.matmul %0, %1, %cst {dimension_numbers = #tpu.dot_dimension_numbers<[1], [0], [0], [1], [0, 0, 1, 1], [], []>} : vector<2x128xf32>, vector<128x32xf32>, vector<2x32xf32> -> vector<2x32xf32>
    %cst_3 = arith.constant 0.000000e+00 : f32
    %3 = vector.broadcast %cst_3 : f32 to vector<2x32xf32>
    %4 = arith.maximumf %2, %3 : vector<2x32xf32>
    %c0_4 = arith.constant 0 : index
    %c0_5 = arith.constant 0 : index
    %5 = vector.load %arg3[%c0_4, %c0_5] : memref<32x4xf32, #tpu.memory_space<vmem>>, vector<32x4xf32>
    %cst_6 = arith.constant dense<0.000000e+00> : vector<2x4xf32>
    %6 = tpu.matmul %4, %5, %cst_6 {dimension_numbers = #tpu.dot_dimension_numbers<[1], [0], [0], [1], [0, 0, 1, 1], [], []>} : vector<2x32xf32>, vector<32x4xf32>, vector<2x4xf32> -> vector<2x4xf32>
    %7 = arith.negf %6 : vector<2x4xf32>
    %8 = math.exp %7 : vector<2x4xf32>
    %cst_7 = arith.constant 1.000000e+00 : f32
    %9 = vector.broadcast %cst_7 : f32 to vector<2x4xf32>
    %10 = arith.addf %9, %8 : vector<2x4xf32>
    %11 = arith.divf %9, %10 : vector<2x4xf32>
    %c0_8 = arith.constant 0 : index
    %c0_9 = arith.constant 0 : index
    %12 = vector.load %arg4[%c0_8, %c0_9] : memref<2x4xf32, #tpu.memory_space<vmem>>, vector<2x4xf32>
    tpu.vector_store %arg4[%c0_8, %c0_9], %11 {strides = array<i32>} : memref<2x4xf32, #tpu.memory_space<vmem>>, vector<2x4xf32>,
    return
  }
  func.func @transform_0(%arg0: i32) -> (i32, i32) {
    %c0_i32 = arith.constant 0 : i32
    %c0_i32_0 = arith.constant 0 : i32
    return %arg0, %c0_i32 : i32, i32
  }
  func.func @transform_1(%arg0: i32) -> (i32, i32) {
    %c0_i32 = arith.constant 0 : i32
    %c0_i32_0 = arith.constant 0 : i32
    %c0_i32_1 = arith.constant 0 : i32
    return %c0_i32, %c0_i32_0 : i32, i32
  }
  func.func @transform_2(%arg0: i32) -> (i32, i32) {
    %c0_i32 = arith.constant 0 : i32
    %c0_i32_0 = arith.constant 0 : i32
    %c0_i32_1 = arith.constant 0 : i32
    return %c0_i32, %c0_i32_0 : i32, i32
  }
  func.func @transform_3(%arg0: i32) -> (i32, i32) {
    %c0_i32 = arith.constant 0 : i32
    %c0_i32_0 = arith.constant 0 : i32
    return %arg0, %c0_i32 : i32, i32
  }
}

</mosaic_0001>

<bundles_post_ra>
// kernel: tpu_custom_call.1
= control target key start
LH: loop header
LB: loop body
LE: loop exit
PB: predicated region body
PF: predicated region fallthrough
CT: control target
= control target key end

     0   :  { %v302_v1 = vmov 0.0   ;;  %vm303_vm0 = vmmov 0   ;;  %s391_s0 = inlined_call_operand.vmem [shape: f32[2,128], index: 0, kind: input, shape index: {}]   ;;  %s392_s1 = inlined_call_operand.vmem [shape: f32[128,32], index: 1, kind: input, shape index: {}]   ;;  %s393_s2 = inlined_call_operand.vmem [shape: f32[32,4], index: 2, kind: input, shape index: {}]   ;;  %s394_s3 = inlined_call_operand.hbm [shape: f32[2,4], index: 3, kind: output, shape index: {}]  }
   0x1   :  { %v31_v0 = vld [vmem:[%s392_s1 + $0x78] sm:$0xff]  ;;  %227 = vmatprep.subr.mxu0 %v302_v1  ;;  %v30_v2 = vld [vmem:[%s392_s1 + $0x70] sm:$0xff]  ;;  %259 = vmatprep.mubr.msk.f32.mxu0 %vm303_vm0, %v302_v1  ;;  %v29_v3 = vld [vmem:[%s392_s1 + $0x68] sm:$0xff] }
   0x2   :  { %228 = vmatpush3.msra.mxu0 %v31_v0  ;;  %262 = vmatprep.subr.mxu1 %v302_v1  ;;  %v28_v4 = vld [vmem:[%s392_s1 + $0x60] sm:$0xff]  ;;  %v106_v5 = vld [vmem:[%s393_s2 + $0x18] sm:$0xff]  ;;  %v105_v6 = vld [vmem:[%s393_s2 + $0x10] sm:$0xff] }
   0x3   :  { %229 = vmatprep.subr.mxu0 %v302_v1  ;;  %270 = vmatprep.mubr.msk.f32.mxu1 %vm303_vm0, %v302_v1 }
   0x4   :  { %230 = vmatpush3.msra.mxu0 %v30_v2  ;;  %263 = vmatpush3.msra.mxu1 %v106_v5 }
   0x5   :  { %231 = vmatprep.subr.mxu0 %v302_v1 }
   0x6   :  { %232 = vmatpush3.msra.mxu0 %v29_v3 }
   0x7   :  { %8 = vsyncpa [#allocation3], 0  ;;  %233 = vmatprep.subr.mxu0 %v302_v1  ;;  %v27_v7 = vld [vmem:[%s392_s1 + $0x58] sm:$0xff]  ;;  %264 = vmatprep.subr.mxu1 %v302_v1  ;;  %v26_v8 = vld [vmem:[%s392_s1 + $0x50] sm:$0xff]  ;;  %vm107_vm1 = vcmask 261120   ;;  %vm187_vm2 = vcmask 25600  }
   0x8   :  { %234 = vmatpush3.msra.mxu0 %v28_v4  ;;  %265 = vmatpush3.msra.mxu1 %v105_v6  ;;  %v25_v9 = vld [vmem:[%s392_s1 + $0x48] sm:$0xff]  ;;  %v24_v10 = vld [vmem:[%s392_s1 + $0x40] sm:$0xff]  ;;  %v23_v11 = vld [vmem:[%s392_s1 + $0x38] sm:$0xff] }
   0x9   :  { %235 = vmatprep.subr.mxu0 %v302_v1  ;;  %266 = vmatprep.subr.mxu1 %v302_v1  ;;  %v22_v12 = vld [vmem:[%s392_s1 + $0x30] sm:$0xff]  ;;  %v21_v13 = vld [vmem:[%s392_s1 + $0x28] sm:$0xff]  ;;  %v20_v14 = vld [vmem:[%s392_s1 + $0x20] sm:$0xff] }
   0xa   :  { %236 = vmatpush3.msra.mxu0 %v27_v7  ;;  %v19_v15 = vld [vmem:[%s392_s1 + $0x18] sm:$0xff]  ;;  %v18_v16 = vld [vmem:[%s392_s1 + $0x10] sm:$0xff]  ;;  %v17_v17 = vld [vmem:[%s392_s1 + $0x8] sm:$0xff] }
   0xb   :  { %237 = vmatprep.subr.mxu0 %v302_v1  ;;  %v16_v18 = vld [vmem:[%s392_s1] sm:$0xff]  ;;  %v104_v20 = vld [vmem:[%s393_s2 + $0x8] sm:$0xff] }
   0xc   :  { %238 = vmatpush3.msra.mxu0 %v26_v8  ;;  %v15_v19 = vld [vmem:[%s391_s0] sm:$0x3]  ;;  %267 = vmatpush3.msra.mxu1 %v104_v20  ;;  %s304_s0 = smov [#allocation2]  }
   0xd   :  { %239 = vmatprep.subr.mxu0 %v302_v1  ;;  %268 = vmatprep.subr.mxu1 %v302_v1  ;;  %v103_v21 = vld [vmem:[%s393_s2] sm:$0xff]  ;;  %s195_s1 = sshll.u32 %s304_s0, 4  ;;  %s196_s1 = int_to_ptr.vmem [resolvable:$true] %s195_s1 }
   0xe   :  { %240 = vmatpush3.msra.mxu0 %v25_v9  ;;  %269 = vmatpush3.msra.mxu1 %v103_v21  ;;  %s280_s2 = scalar_lea.vmem %s196_s1, 32  ;;  %p285_p1 = scmp.lt.s32.totalorder %s196_s1, %s196_s1 }
   0xf   :  { %241 = vmatprep.subr.mxu0 %v302_v1  ;;  %p281_p0 = scmp.ne.s32.totalorder %s196_s1, %s280_s2  ;;  %p286_p2 = scmp.lt.s32.totalorder %s280_s2, %s280_s2 }
  0x10   :  { %242 = vmatpush3.msra.mxu0 %v24_v10 }
  0x11   :  { %243 = vmatprep.subr.mxu0 %v302_v1  ;;  %p287_p3 = por %p286_p2, %p285_p1 }
  0x12   :  { %244 = vmatpush3.msra.mxu0 %v23_v11 }
  0x13   :  { %245 = vmatprep.subr.mxu0 %v302_v1  ;;  %p288_p4 = pnand %p287_p3, %p281_p0 }
  0x14   :  { %246 = vmatpush3.msra.mxu0 %v22_v12 }
  0x15   :  { %247 = vmatprep.subr.mxu0 %v302_v1 }
  0x16   :  { %248 = vmatpush3.msra.mxu0 %v21_v13 }
  0x17   :  { %249 = vmatprep.subr.mxu0 %v302_v1 }
  0x18   :  { %250 = vmatpush3.msra.mxu0 %v20_v14 }
  0x19   :  { %251 = vmatprep.subr.mxu0 %v302_v1 }
  0x1a   :  { %252 = vmatpush3.msra.mxu0 %v19_v15 }
  0x1b   :  { %253 = vmatprep.subr.mxu0 %v302_v1 }
  0x1c   :  { %254 = vmatpush3.msra.mxu0 %v18_v16 }
  0x1d   :  { %255 = vmatprep.subr.mxu0 %v302_v1 }
  0x1e   :  { %256 = vmatpush3.msra.mxu0 %v17_v17 }
  0x1f   :  { %257 = vmatprep.subr.mxu0 %v302_v1 }
  0x20   :  { %258 = vmatpush3.msra.mxu0 %v16_v18 }
  0x21   :  { %260 = vmatmul.mubr.f32.vlgmr.msra.gmra.mxu0 %v15_v19 }
  0xe1   :  { %v98_v22 = vpop.f32.mrf.mxu0 }
  0xe2   :  { %v102_v23 = vmax.f32 %v98_v22, 0.0 }
  0xe3   :  { %v261_v24 = vpop.f32.mrf.mxu0 }
  0xe4   :  { %271 = vmatmul.mubr.msk.f32.vlgmr.msra.gmra.mxu1 %vm107_vm1, %v102_v23 }
 0x1a4   :  { %v177_v25 = vpop.f32.mrf.mxu1 }
 0x1a5   :  { %v204_v26 = vmul.f32 -1.442695, %v177_v25 }
 0x1a6   :  { %v272_v27 = vpop.f32.mrf.mxu1 }
 0x1a7   :  { %276 = vpow2.f32 %v204_v26 }
 0x1b4   :  { %v277_v28 = vpop.eup %276 }
 0x1b5   :  { %v184_v29 = vadd.f32 1.0, %v277_v28 }
 0x1b7   :  { %278 = vrcp.f32 %v184_v29 }
 0x1c4   :  { %v279_v30 = vpop.eup %278 }
 0x1c5   :  { %188 = vst.msk [vmem:[#allocation2] sm:$0x3] %vm187_vm2, %v279_v30 }
 0x1c6   :  { %291 = shalt.err (!%p288_p4)
}
 0x1c7   :  { %198 = dma.vmem_to_hbm [thread:$0]  %s196_s1, 32, %s394_s3, [#allocation3]  }
 0x1c8   :  { %300 = dma.done.wait [#allocation3], 32  }
 0x1c9   :  { %301 = vsyncadd [#allocation3], 4294967264 }
 0x1ca   :  { %202 = vsyncpa [#allocation3], 1 }

</bundles_post_ra>
